<compile_context>
chip_gen: v7x
topology: tpu7x:2x2x1
jax: 0.10.0
libtpu: 0.0.40
codegen_flags: <defaults>
</compile_context>

<pallas_src>
import functools

import jax
import jax.numpy as jnp
from jax import lax
from jax.experimental import pallas as pl
from jax.experimental.pallas import tpu as pltpu

D_IN = 6
D_HID = 128


def mlp_kernel(x_ref, w1_ref, b1_ref, w2_ref, b2_ref, w3_ref, b3_ref, o_ref):
    """Fused 3-layer MLP on one batch tile, feature-major internally.

    x_ref : (tb, 6)    f32  -- native (batch, features) layout
    w1_ref: (128, 6)   f32
    b1_ref: (128, 1)   f32
    w2_ref: (128, 128) bf16 (compute dtype)
    b2_ref: (128, 1)   f32
    w3_ref: (1, 128)   bf16
    b3_ref: (1, 1)     f32 scalar in SMEM
    o_ref : (1, tb)    f32  -- lane-dense output slab
    """
    cdt = w2_ref.dtype

    # layer 1: W1 @ x^T via dot_general contracting the 6-feature axis of both
    # operands ("NT" form).  f32 in / f32 out; K=6 so MXU cost is negligible.
    h1 = lax.dot_general(
        w1_ref[...], x_ref[...],
        dimension_numbers=(((1,), (1,)), ((), ())),
        preferred_element_type=jnp.float32)                      # (128, tb)
    h1 = jnp.maximum(h1 + b1_ref[...], 0.0).astype(cdt)

    # layer 2: (128, 128) @ (128, tb) -> (128, tb), bf16 MXU, f32 accumulate
    h2 = jnp.dot(w2_ref[...], h1, preferred_element_type=jnp.float32)
    h2 = jnp.maximum(h2 + b2_ref[...], 0.0).astype(cdt)

    # layer 3: (1, 128) @ (128, tb) -> (1, tb); lane-dense store
    out = jnp.dot(w3_ref[...], h2, preferred_element_type=jnp.float32)
    o_ref[...] = out + b3_ref[0, 0]


def _tile_batch(bsz, tb):
    """Effective batch tile (multiple of 128) and padded batch size.

    Clamp the tile to the batch so small batches don't pad to a huge tile, but
    when there are >=2 lane-rounds of data force at least 2 grid steps so the
    'parallel' batch axis can occupy both TensorCores on v7x.
    """
    rounded = pl.cdiv(bsz, 128) * 128
    if rounded >= 256:
        half = pl.cdiv(rounded // 128, 2) * 128      # round_up(rounded/2, 128)
        tb_eff = max(128, min(tb, half))
    else:
        tb_eff = 128
    padded = pl.cdiv(bsz, tb_eff) * tb_eff
    return tb_eff, padded


@functools.partial(jax.jit, static_argnames=("tb", "compute_dtype"))
def mlp_forward(x, params, tb=2048, compute_dtype=jnp.bfloat16):
    """x: (batch, 6) f32 -> (batch, 1) f32."""
    w1, b1, w2, b2, w3, b3 = params          # PyTorch layout: W (out, in), b (out,)
    bsz, d_in = x.shape
    d_h = w1.shape[0]                        # 128
    assert d_in == w1.shape[1] == D_IN and d_h == D_HID
    assert tb % 128 == 0, "batch tile must be a multiple of 128 (lane width)"

    tb_eff, padded = _tile_batch(bsz, tb)
    num_tiles = padded // tb_eff

    x = x.astype(jnp.float32)
    if padded != bsz:
        # Only the ragged remainder of the tiny (batch, 6) input is padded; the
        # transpose/convert HBM passes of the previous version are gone.
        x = jnp.pad(x, ((0, padded - bsz), (0, 0)))

    w1c = w1.astype(jnp.float32)                       # (128, 6)   layer 1 stays f32
    w2c = w2.astype(compute_dtype)                     # (128, 128)
    w3c = w3.astype(compute_dtype)                     # (1, 128)
    b1c = b1.reshape(d_h, 1).astype(jnp.float32)       # (128, 1)
    b2c = b2.reshape(d_h, 1).astype(jnp.float32)       # (128, 1)
    b3c = b3.reshape(1, 1).astype(jnp.float32)         # (1, 1) -> SMEM scalar

    out = pl.pallas_call(
        mlp_kernel,
        out_shape=jax.ShapeDtypeStruct((1, padded), jnp.float32),
        grid_spec=pltpu.PrefetchScalarGridSpec(
            num_scalar_prefetch=0,
            grid=(num_tiles,),
            in_specs=[
                pl.BlockSpec((tb_eff, d_in), lambda i: (i, 0)),      # x tile (native layout)
                pl.BlockSpec((d_h, d_in), lambda i: (0, 0)),         # W1 (resident)
                pl.BlockSpec((d_h, 1), lambda i: (0, 0)),            # b1
                pl.BlockSpec((d_h, d_h), lambda i: (0, 0)),          # W2
                pl.BlockSpec((d_h, 1), lambda i: (0, 0)),            # b2
                pl.BlockSpec((1, d_h), lambda i: (0, 0)),            # W3
                pl.BlockSpec(memory_space=pltpu.MemorySpace.SMEM),   # b3 scalar
            ],
            out_specs=pl.BlockSpec((1, tb_eff), lambda i: (0, i)),
        ),
        compiler_params=pltpu.CompilerParams(
            dimension_semantics=("parallel",),   # shard batch tiles across TCs (v7x)
        ),
    )(x, w1c, b1c, w2c, b2c, w3c, b3c)

    # (1, padded) lane-dense slab -> (batch, 1); slice AFTER the reshape.
    return out.reshape(padded, 1)[:bsz]


def init_params(key):
    """PyTorch nn.Linear default init: U(-1/sqrt(fan_in), 1/sqrt(fan_in)),
    weights stored in native (out_features, in_features) layout."""
    def linear(key, fan_in, fan_out):
        kw, kb = jax.random.split(key)
        bound = 1.0 / jnp.sqrt(fan_in)
        w = jax.random.uniform(kw, (fan_out, fan_in), jnp.float32, -bound, bound)
        b = jax.random.uniform(kb, (fan_out,), jnp.float32, -bound, bound)
        return w, b

    k1, k2, k3 = jax.random.split(key, 3)
    w1, b1 = linear(k1, 6, 128)
    w2, b2 = linear(k2, 128, 128)
    w3, b3 = linear(k3, 128, 1)
    return (w1, b1, w2, b2, w3, b3)


def reference_forward(x, params):
    """Pure-JAX f32 reference matching the PyTorch module's semantics."""
    w1, b1, w2, b2, w3, b3 = params
    h = jnp.maximum(x @ w1.T + b1, 0.0)
    h = jnp.maximum(h @ w2.T + b2, 0.0)
    return h @ w3.T + b3


if __name__ == "__main__":
    key = jax.random.PRNGKey(0)
    kp, kx, kx2, kx3 = jax.random.split(key, 4)
    params = init_params(kp)

    # batch=200: not a multiple of 128 -> exercises padding; the >=2-tile clamp
    # gives a 2-step "parallel" grid (megacore path on v7x).
    x = jax.random.normal(kx, (200, 6), jnp.float32)
    out = jax.block_until_ready(mlp_forward(x, params))
    ref = reference_forward(x, params)
    assert out.shape == (200, 1), out.shape
    assert jnp.allclose(out, ref, atol=2e-2, rtol=2e-2), (
        "mismatch vs f32 reference, max abs err "
        f"{float(jnp.max(jnp.abs(out - ref)))}")

    # small batch -> single 128-wide tile.
    x2 = jax.random.normal(kx2, (64, 6), jnp.float32)
    out2 = jax.block_until_ready(mlp_forward(x2, params))
    assert out2.shape == (64, 1)
    assert jnp.allclose(out2, reference_forward(x2, params), atol=2e-2, rtol=2e-2)

    # multi-tile grid with a smaller tile cap (3 grid steps).
    x3 = jax.random.normal(kx3, (520, 6), jnp.float32)
    out3 = jax.block_until_ready(mlp_forward(x3, params, tb=256))
    assert out3.shape == (520, 1)
    assert jnp.allclose(out3, reference_forward(x3, params), atol=2e-2, rtol=2e-2)

    print("KERNEL_OK")
</pallas_src>

<mosaic_0001>
module attributes {stable_mosaic.version = 11 : i64} {
  func.func @mlp_kernel(%arg0: i32, %arg1: memref<128x6xf32, #tpu.memory_space<vmem>>, %arg2: memref<128x6xf32, #tpu.memory_space<vmem>>, %arg3: memref<128x1xf32, #tpu.memory_space<vmem>>, %arg4: memref<128x128xbf16, #tpu.memory_space<vmem>>, %arg5: memref<128x1xf32, #tpu.memory_space<vmem>>, %arg6: memref<1x128xbf16, #tpu.memory_space<vmem>>, %arg7: memref<1x1xf32, #tpu.memory_space<smem>>, %arg8: memref<1x128xf32, #tpu.memory_space<vmem>>) attributes {dimension_semantics = [#tpu.dimension_semantics<parallel>], iteration_bounds = array<i64: 2>, scalar_prefetch = 0 : i64, scratch_operands = 0 : i64, tpu.core_type = #tpu.core_type<tc>, window_params = [{transform_indices = @transform_0, window_bounds = array<i64: 128, 6>}, {pipeline_mode = #tpu.pipeline_mode<synchronous>, transform_indices = @transform_1, window_bounds = array<i64: 128, 6>}, {pipeline_mode = #tpu.pipeline_mode<synchronous>, transform_indices = @transform_2, window_bounds = array<i64: 128, 1>}, {pipeline_mode = #tpu.pipeline_mode<synchronous>, transform_indices = @transform_3, window_bounds = array<i64: 128, 128>}, {pipeline_mode = #tpu.pipeline_mode<synchronous>, transform_indices = @transform_4, window_bounds = array<i64: 128, 1>}, {pipeline_mode = #tpu.pipeline_mode<synchronous>, transform_indices = @transform_5, window_bounds = array<i64: 1, 128>}, {transform_indices = @transform_6, window_bounds = array<i64: 1, 1>}, {transform_indices = @transform_7, window_bounds = array<i64: 1, 128>}]} {
    %c0 = arith.constant 0 : index
    %c0_0 = arith.constant 0 : index
    %0 = vector.load %arg2[%c0, %c0_0] : memref<128x6xf32, #tpu.memory_space<vmem>>, vector<128x6xf32>
    %c0_1 = arith.constant 0 : index
    %c0_2 = arith.constant 0 : index
    %1 = vector.load %arg1[%c0_1, %c0_2] : memref<128x6xf32, #tpu.memory_space<vmem>>, vector<128x6xf32>
    %cst = arith.constant dense<0.000000e+00> : vector<128x128xf32>
    %2 = tpu.matmul %0, %1, %cst {dimension_numbers = #tpu.dot_dimension_numbers<[1], [1], [0], [0], [0, 0, 1, 0], [], []>} : vector<128x6xf32>, vector<128x6xf32>, vector<128x128xf32> -> vector<128x128xf32>
    %c0_3 = arith.constant 0 : index
    %c0_4 = arith.constant 0 : index
    %3 = vector.load %arg3[%c0_3, %c0_4] : memref<128x1xf32, #tpu.memory_space<vmem>>, vector<128x1xf32>
    %4 = vector.broadcast %3 : vector<128x1xf32> to vector<128x128xf32>
    %5 = arith.addf %2, %4 : vector<128x128xf32>
    %cst_5 = arith.constant 0.000000e+00 : f32
    %6 = vector.broadcast %cst_5 : f32 to vector<128x128xf32>
    %7 = arith.maximumf %5, %6 : vector<128x128xf32>
    %8 = arith.truncf %7 : vector<128x128xf32> to vector<128x128xbf16>
    %c0_6 = arith.constant 0 : index
    %c0_7 = arith.constant 0 : index
    %9 = vector.load %arg4[%c0_6, %c0_7] : memref<128x128xbf16, #tpu.memory_space<vmem>>, vector<128x128xbf16>
    %cst_8 = arith.constant dense<0.000000e+00> : vector<128x128xf32>
    %10 = tpu.matmul %9, %8, %cst_8 {dimension_numbers = #tpu.dot_dimension_numbers<[1], [0], [0], [1], [0, 0, 1, 1], [], []>} : vector<128x128xbf16>, vector<128x128xbf16>, vector<128x128xf32> -> vector<128x128xf32>
    %c0_9 = arith.constant 0 : index
    %c0_10 = arith.constant 0 : index
    %11 = vector.load %arg5[%c0_9, %c0_10] : memref<128x1xf32, #tpu.memory_space<vmem>>, vector<128x1xf32>
    %12 = vector.broadcast %11 : vector<128x1xf32> to vector<128x128xf32>
    %13 = arith.addf %10, %12 : vector<128x128xf32>
    %cst_11 = arith.constant 0.000000e+00 : f32
    %14 = vector.broadcast %cst_11 : f32 to vector<128x128xf32>
    %15 = arith.maximumf %13, %14 : vector<128x128xf32>
    %16 = arith.truncf %15 : vector<128x128xf32> to vector<128x128xbf16>
    %c0_12 = arith.constant 0 : index
    %c0_13 = arith.constant 0 : index
    %17 = vector.load %arg6[%c0_12, %c0_13] : memref<1x128xbf16, #tpu.memory_space<vmem>>, vector<1x128xbf16>
    %cst_14 = arith.constant dense<0.000000e+00> : vector<1x128xf32>
    %18 = tpu.matmul %17, %16, %cst_14 {dimension_numbers = #tpu.dot_dimension_numbers<[1], [0], [0], [1], [0, 0, 1, 1], [], []>} : vector<1x128xbf16>, vector<128x128xbf16>, vector<1x128xf32> -> vector<1x128xf32>
    %c0_15 = arith.constant 0 : index
    %c0_16 = arith.constant 0 : index
    %19 = memref.load %arg7[%c0_15, %c0_16] : memref<1x1xf32, #tpu.memory_space<smem>>
    %20 = vector.broadcast %19 : f32 to vector<1x128xf32>
    %21 = arith.addf %18, %20 : vector<1x128xf32>
    %c0_17 = arith.constant 0 : index
    %c0_18 = arith.constant 0 : index
    %22 = vector.load %arg8[%c0_17, %c0_18] : memref<1x128xf32, #tpu.memory_space<vmem>>, vector<1x128xf32>
    tpu.vector_store %arg8[%c0_17, %c0_18], %21 {strides = array<i32>} : memref<1x128xf32, #tpu.memory_space<vmem>>, vector<1x128xf32>,
    return
  }
  func.func @transform_0(%arg0: i32) -> (i32, i32) {
    %c0_i32 = arith.constant 0 : i32
    %c0_i32_0 = arith.constant 0 : i32
    return %arg0, %c0_i32 : i32, i32
  }
  func.func @transform_1(%arg0: i32) -> (i32, i32) {
    %c0_i32 = arith.constant 0 : i32
    %c0_i32_0 = arith.constant 0 : i32
    %c0_i32_1 = arith.constant 0 : i32
    return %c0_i32, %c0_i32_0 : i32, i32
  }
  func.func @transform_2(%arg0: i32) -> (i32, i32) {
    %c0_i32 = arith.constant 0 : i32
    %c0_i32_0 = arith.constant 0 : i32
    %c0_i32_1 = arith.constant 0 : i32
    return %c0_i32, %c0_i32_0 : i32, i32
  }
  func.func @transform_3(%arg0: i32) -> (i32, i32) {
    %c0_i32 = arith.constant 0 : i32
    %c0_i32_0 = arith.constant 0 : i32
    %c0_i32_1 = arith.constant 0 : i32
    return %c0_i32, %c0_i32_0 : i32, i32
  }
  func.func @transform_4(%arg0: i32) -> (i32, i32) {
    %c0_i32 = arith.constant 0 : i32
    %c0_i32_0 = arith.constant 0 : i32
    %c0_i32_1 = arith.constant 0 : i32
    return %c0_i32, %c0_i32_0 : i32, i32
  }
  func.func @transform_5(%arg0: i32) -> (i32, i32) {
    %c0_i32 = arith.constant 0 : i32
    %c0_i32_0 = arith.constant 0 : i32
    %c0_i32_1 = arith.constant 0 : i32
    return %c0_i32, %c0_i32_0 : i32, i32
  }
  func.func @transform_6(%arg0: i32) -> (i32, i32) {
    %c0_i32 = arith.constant 0 : i32
    %c0_i32_0 = arith.constant 0 : i32
    %c0_i32_1 = arith.constant 0 : i32
    return %c0_i32, %c0_i32_0 : i32, i32
  }
  func.func @transform_7(%arg0: i32) -> (i32, i32) {
    %c0_i32 = arith.constant 0 : i32
    %c0_i32_0 = arith.constant 0 : i32
    return %c0_i32, %arg0 : i32, i32
  }
}

</mosaic_0001>

<bundles_post_ra>
// kernel: mlp_forward.1
= control target key start
LH: loop header
LB: loop body
LE: loop exit
PB: predicated region body
PF: predicated region fallthrough
CT: control target
= control target key end

     0   :  { %s1382_s26 = smov 0   ;;  %s1656_s0 = inlined_call_operand.vmem [shape: f32[256,6], index: 0, kind: input, shape index: {}]   ;;  %s1657_s1 = inlined_call_operand.vmem [shape: f32[128,6], index: 1, kind: input, shape index: {}]   ;;  %s1658_s2 = inlined_call_operand.vmem [shape: f32[128,1], index: 2, kind: input, shape index: {}]   ;;  %s1659_s3 = inlined_call_operand.vmem [shape: bf16[128,128], index: 3, kind: input, shape index: {}]   ;;  %s1660_s4 = inlined_call_operand.vmem [shape: f32[128,1], index: 4, kind: input, shape index: {}]   ;;  %s1661_s5 = inlined_call_operand.vmem [shape: bf16[1,128], index: 5, kind: input, shape index: {}]   ;;  %s1662_s6 = inlined_call_operand.<no memory space> [shape: f32[1,1], index: 6, kind: input, shape index: {}]   ;;  %s1663_s7 = inlined_call_operand.vmem [shape: f32[1,256], index: 7, kind: output, shape index: {}]  }
   0x1   :  { %12 = sst [smem:[#allocation2]] %s1662_s6 }
   0x2 LB: > { %s1388_s27 = sadd.s32 4294967295, %s1334_s26   ;;  %p1049_p0 = scmp.ge.s32.totalorder %s1334_s26, 1  ;;  %s1334_s26 = sphi %s1382_s26, %s18_s26  }
   0x3   : > { %p239_p1 = scmp.lt.s32.totalorder %s1334_s26, 3 }
   0x5   : > { %p240_p2 = pnand %p1049_p0, %p239_p1 }
   0x6   : > { %s1050_s28 = sshll.u32 (!%p240_p2), %s1388_s27, 4  ;;  %vm407_vm0 = vcmask (!%p240_p2), 48128   ;;  %v279_v0 = vld [vmem:[%s1657_s1] sm:$0xff] (!%p240_p2)  ;;  %v1336_v1 = vmov (!%p240_p2), 0   ;;  %v313_v3 = vld [vmem:[%s1658_s2 + $0x10] sm:$0xff] (!%p240_p2)  ;;  %v312_v5 = vld [vmem:[%s1658_s2 + $0x8] sm:$0xff] (!%p240_p2) }
   0x7   : > { %243 = sbr.rel (%p240_p2) target bundleno = 802 (0x322), region = 48  ;;  %p270_p3 = scmp.lt.s32.totalorder (!%p240_p2), %s1050_s28, 31  ;;  %1183 = vmatprep.mubr.msk.f32.mxu0 (!%p240_p2), %vm407_vm0, %v279_v0  ;;  %1318 = vset.pattern.permute.xlu0 (!%p240_p2), %v1336_v1  ;;  %v311_v2 = vld [vmem:[%s1658_s2] sm:$0xff] (!%p240_p2)  ;;  %vm1410_vm1 = vmpackc.low (!%p240_p2), %vm407_vm0, %vm407_vm0  ;;  %v314_v6 = vld [vmem:[%s1658_s2 + $0x18] sm:$0xff] (!%p240_p2)  ;;  %vm1338_vm2 = vmmov (!%p240_p2), 0  }
   0x8   : > { %1319 = vset.pattern.permute.xlu1 (!%p240_p2), %v1336_v1  ;;  %329 = vperm.xlu0 (!%p240_p2), %1318, %v311_v2   ;;  %v315_v13 = vld [vmem:[%s1658_s2 + $0x20] sm:$0xff] (!%p240_p2)  ;;  %v316_v14 = vld [vmem:[%s1658_s2 + $0x28] sm:$0xff] (!%p240_p2)  ;;  %v317_v17 = vld [vmem:[%s1658_s2 + $0x30] sm:$0xff] (!%p240_p2)  ;;  %s955_s15 = sld [smem:[#allocation2]] (!%p240_p2)  ;;  %p275_p4 = scmp.lt.s32.totalorder (!%p240_p2), %s1388_s27, 1 }
   0x9   : > { %339 = vperm.xlu1 (!%p240_p2), %1319, %v313_v3   ;;  %v318_v18 = vld [vmem:[%s1658_s2 + $0x38] sm:$0xff] (!%p240_p2)  ;;  %v319_v20 = vld [vmem:[%s1658_s2 + $0x40] sm:$0xff] (!%p240_p2)  ;;  %v320_v21 = vld [vmem:[%s1658_s2 + $0x48] sm:$0xff] (!%p240_p2) }
   0xa   : > { %v321_v24 = vld [vmem:[%s1658_s2 + $0x50] sm:$0xff] (!%p240_p2)  ;;  %v322_v25 = vld [vmem:[%s1658_s2 + $0x58] sm:$0xff] (!%p240_p2)  ;;  %v323_v27 = vld [vmem:[%s1658_s2 + $0x60] sm:$0xff] (!%p240_p2) }
   0xb   : > { %v324_v28 = vld [vmem:[%s1658_s2 + $0x68] sm:$0xff] (!%p240_p2)  ;;  %v325_v31 = vld [vmem:[%s1658_s2 + $0x70] sm:$0xff] (!%p240_p2)  ;;  %v326_v32 = vld [vmem:[%s1658_s2 + $0x78] sm:$0xff] (!%p240_p2) }
   0xc   : > { %334 = vperm.xlu0 (!%p240_p2), %1318, %v312_v5   ;;  %v689_v34 = vld [vmem:[%s1660_s4] sm:$0xff] (!%p240_p2)  ;;  %v690_v35 = vld [vmem:[%s1660_s4 + $0x8] sm:$0xff] (!%p240_p2)  ;;  %v691_v38 = vld [vmem:[%s1660_s4 + $0x10] sm:$0xff] (!%p240_p2) }
   0xd   : > { %344 = vperm.xlu1 (!%p240_p2), %1319, %v314_v6   ;;  %v692_v39 = vld [vmem:[%s1660_s4 + $0x18] sm:$0xff] (!%p240_p2)  ;;  %v693_v41 = vld [vmem:[%s1660_s4 + $0x20] sm:$0xff] (!%p240_p2)  ;;  %v694_v42 = vld [vmem:[%s1660_s4 + $0x28] sm:$0xff] (!%p240_p2) }
   0xe   : > { %s1667_s28 = smov (!%p270_p3, %s1050_s28), 31  ;;  %v695_v45 = vld [vmem:[%s1660_s4 + $0x30] sm:$0xff]  ;;  %v696_v46 = vld [vmem:[%s1660_s4 + $0x38] sm:$0xff]  ;;  %v697_v48 = vld [vmem:[%s1660_s4 + $0x40] sm:$0xff]  ;;  %s1669_s27 = smov (!%p275_p4, %s1388_s27), 1 }
   0xf   : > { %s1051_s9 = sshll.u32 %s1667_s28, 3  ;;  %v698_v49 = vld [vmem:[%s1660_s4 + $0x48] sm:$0xff]  ;;  %v699_v52 = vld [vmem:[%s1660_s4 + $0x50] sm:$0xff]  ;;  %v700_v53 = vld [vmem:[%s1660_s4 + $0x58] sm:$0xff]  ;;  %s277_s18 = scalar_lea.vmem %s1663_s7, %s1669_s27 }
  0x10   : > { %s1406_s14 = scalar_lea.vmem %s1656_s0, %s1051_s9  ;;  %349 = vperm.xlu0 %1318, %v315_v13   ;;  %v701_v55 = vld [vmem:[%s1660_s4 + $0x60] sm:$0xff]  ;;  %v702_v56 = vld [vmem:[%s1660_s4 + $0x68] sm:$0xff]  ;;  %v703_v57 = vld [vmem:[%s1660_s4 + $0x70] sm:$0xff] }
  0x11   : > { %v295_v7 = vld [vmem:[%s1406_s14] sm:$0xff]  ;;  %v296_v8 = vld [vmem:[%s1406_s14 + $0x8] sm:$0xff]  ;;  %v297_v9 = vld [vmem:[%s1406_s14 + $0x10] sm:$0xff]  ;;  %354 = vperm.xlu1 %1319, %v316_v14  }
  0x12   : > { %v1259_v10 = vpack.c.bf16 %v296_v8, %v295_v7  ;;  %v298_v11 = vld [vmem:[%s1406_s14 + $0x18] sm:$0xff]  ;;  %v299_v15 = vld [vmem:[%s1406_s14 + $0x20] sm:$0xff]  ;;  %v300_v16 = vld [vmem:[%s1406_s14 + $0x28] sm:$0xff] }
  0x13   : > { %v1265_v12 = vpack.c.bf16 %v298_v11, %v297_v9  ;;  %v1271_v19 = vpack.c.bf16 %v300_v16, %v299_v15  ;;  %v301_v22 = vld [vmem:[%s1406_s14 + $0x30] sm:$0xff]  ;;  %v302_v23 = vld [vmem:[%s1406_s14 + $0x38] sm:$0xff]  ;;  %v303_v29 = vld [vmem:[%s1406_s14 + $0x40] sm:$0xff] }
  0x14   : > { %1261 = vmatprep.subr.msk.bf16.mxu0 %vm1410_vm1, %v1259_v10  ;;  %359 = vperm.xlu0 %1318, %v317_v17   ;;  %v1277_v26 = vpack.c.bf16 %v302_v23, %v301_v22  ;;  %v304_v30 = vld [vmem:[%s1406_s14 + $0x48] sm:$0xff]  ;;  %v305_v36 = vld [vmem:[%s1406_s14 + $0x50] sm:$0xff]  ;;  %v306_v37 = vld [vmem:[%s1406_s14 + $0x58] sm:$0xff] }
  0x15   : > { %1264 = vmatpush3.bf16.xpose.msk.msra.mxu0 %vm1410_vm1, %v1259_v10  ;;  %364 = vperm.xlu1 %1319, %v318_v18   ;;  %v1283_v33 = vpack.c.bf16 %v304_v30, %v303_v29  ;;  %v1289_v40 = vpack.c.bf16 %v306_v37, %v305_v36  ;;  %v307_v43 = vld [vmem:[%s1406_s14 + $0x60] sm:$0xff]  ;;  %v308_v44 = vld [vmem:[%s1406_s14 + $0x68] sm:$0xff]  ;;  %v309_v50 = vld [vmem:[%s1406_s14 + $0x70] sm:$0xff] }
  0x16   : > { %1267 = vmatprep.subr.msk.bf16.mxu0 %vm1410_vm1, %v1265_v12  ;;  %v1295_v47 = vpack.c.bf16 %v308_v44, %v307_v43  ;;  %v310_v51 = vld [vmem:[%s1406_s14 + $0x78] sm:$0xff]  ;;  %v280_v59 = vld [vmem:[%s1657_s1 + $0x8] sm:$0xff]  ;;  %v281_v60 = vld [vmem:[%s1657_s1 + $0x10] sm:$0xff] }
  0x17   : > { %v1301_v54 = vpack.c.bf16 %v310_v51, %v309_v50  ;;  %v704_v58 = vld [vmem:[%s1660_s4 + $0x78] sm:$0xff]  ;;  %v283_v62 = vld [vmem:[%s1657_s1 + $0x20] sm:$0xff]  ;;  %v284_v63 = vld [vmem:[%s1657_s1 + $0x28] sm:$0xff] }
  0x18   : > { %369 = vperm.xlu0 %1318, %v319_v20   ;;  %v282_v61 = vld [vmem:[%s1657_s1 + $0x18] sm:$0xff]  ;;  %v285_v0 = vld [vmem:[%s1657_s1 + $0x30] sm:$0xff]  ;;  %v287_v2 = vld [vmem:[%s1657_s1 + $0x40] sm:$0xff] }
  0x19   : > { %374 = vperm.xlu1 %1319, %v320_v21   ;;  %v286_v1 = vld [vmem:[%s1657_s1 + $0x38] sm:$0xff]  ;;  %v288_v3 = vld [vmem:[%s1657_s1 + $0x48] sm:$0xff]  ;;  %v289_v4 = vld [vmem:[%s1657_s1 + $0x50] sm:$0xff] }
  0x1a   : > { %v290_v5 = vld [vmem:[%s1657_s1 + $0x58] sm:$0xff]  ;;  %v291_v6 = vld [vmem:[%s1657_s1 + $0x60] sm:$0xff]  ;;  %v292_v7 = vld [vmem:[%s1657_s1 + $0x68] sm:$0xff] }
  0x1b   : > { %v293_v8 = vld [vmem:[%s1657_s1 + $0x70] sm:$0xff]  ;;  %v294_v9 = vld [vmem:[%s1657_s1 + $0x78] sm:$0xff]  ;;  %v1320_v10 = vld [vmem:[%s1659_s3] sm:$0xff]  }
  0x1c   : > { %379 = vperm.xlu0 %1318, %v321_v24   ;;  %1223 = vmatprep.mubr.bf16.mxu1 %v1320_v10 }
  0x1d   : > { %1270 = vmatpush3.bf16.xpose.msk.msra.mxu0 %vm1410_vm1, %v1265_v12  ;;  %384 = vperm.xlu1 %1319, %v322_v25  }
  0x1e   : > { %1273 = vmatprep.subr.msk.bf16.mxu0 %vm1410_vm1, %v1271_v19 }
  0x20   : > { %389 = vperm.xlu0 %1318, %v323_v27  }
  0x21   : > { %394 = vperm.xlu1 %1319, %v324_v28  }
  0x24   : > { %399 = vperm.xlu0 %1318, %v325_v31  }
  0x25   : > { %1276 = vmatpush3.bf16.xpose.msk.msra.mxu0 %vm1410_vm1, %v1271_v19  ;;  %404 = vperm.xlu1 %1319, %v326_v32  }
  0x26   : > { %1279 = vmatprep.subr.msk.bf16.mxu0 %vm1410_vm1, %v1277_v26 }
  0x28   : > { %707 = vperm.xlu0 %1318, %v689_v34  }
  0x29   : > { %712 = vperm.xlu1 %1319, %v690_v35  }
  0x2c   : > { %717 = vperm.xlu0 %1318, %v691_v38  }
  0x2d   : > { %1282 = vmatpush3.bf16.xpose.msk.msra.mxu0 %vm1410_vm1, %v1277_v26  ;;  %722 = vperm.xlu1 %1319, %v692_v39  }
  0x2e   : > { %1285 = vmatprep.subr.msk.bf16.mxu0 %vm1410_vm1, %v1283_v33 }
  0x30   : > { %727 = vperm.xlu0 %1318, %v693_v41  }
  0x31   : > { %732 = vperm.xlu1 %1319, %v694_v42  }
  0x34   : > { %737 = vperm.xlu0 %1318, %v695_v45  }
  0x35   : > { %1288 = vmatpush3.bf16.xpose.msk.msra.mxu0 %vm1410_vm1, %v1283_v33  ;;  %742 = vperm.xlu1 %1319, %v696_v46  }
  0x36   : > { %1291 = vmatprep.subr.msk.bf16.mxu0 %vm1410_vm1, %v1289_v40 }
  0x38   : > { %747 = vperm.xlu0 %1318, %v697_v48  }
  0x39   : > { %752 = vperm.xlu1 %1319, %v698_v49  }
  0x3c   : > { %757 = vperm.xlu0 %1318, %v699_v52  }
  0x3d   : > { %1294 = vmatpush3.bf16.xpose.msk.msra.mxu0 %vm1410_vm1, %v1289_v40  ;;  %762 = vperm.xlu1 %1319, %v700_v53  }
  0x3e   : > { %1297 = vmatprep.subr.msk.bf16.mxu0 %vm1410_vm1, %v1295_v47 }
  0x40   : > { %767 = vperm.xlu0 %1318, %v701_v55  }
  0x41   : > { %772 = vperm.xlu1 %1319, %v702_v56  }
  0x44   : > { %777 = vperm.xlu0 %1318, %v703_v57  }
  0x45   : > { %1300 = vmatpush3.bf16.xpose.msk.msra.mxu0 %vm1410_vm1, %v1295_v47  ;;  %782 = vperm.xlu1 %1319, %v704_v58  }
  0x46   : > { %1303 = vmatprep.subr.msk.bf16.mxu0 %vm1410_vm1, %v1301_v54 }
  0x4d   : > { %1306 = vmatpush3.bf16.xpose.msk.msra.mxu0 %vm1410_vm1, %v1301_v54 }
  0x54   : > { %1184 = vmatmul.mubr.msk.f32.vlgmr.msra.gmra.mrb[0].mxu0 %vm407_vm0, %v280_v59 }
  0x55   : > { %1186 = vmatprep.mubr.msk.f32.mxu0 %vm407_vm0, %v281_v60 }
  0x58   : > { %1187 = vmatmul.mubr.msk.f32.gmra.mrb[2].mxu0 %vm407_vm0, %v282_v61 }
  0x59   : > { %1189 = vmatprep.mubr.msk.f32.mxu0 %vm407_vm0, %v283_v62 }
  0x5c   : > { %1190 = vmatmul.mubr.msk.f32.gmra.mrb[4].mxu0 %vm407_vm0, %v284_v63 }
  0x5d   : > { %1192 = vmatprep.mubr.msk.f32.mxu0 %vm407_vm0, %v285_v0 }
  0x60   : > { %1193 = vmatmul.mubr.msk.f32.gmra.mrb[6].mxu0 %vm407_vm0, %v286_v1 }
  0x61   : > { %1195 = vmatprep.mubr.msk.f32.mxu0 %vm407_vm0, %v287_v2 }
  0x64   : > { %1196 = vmatmul.mubr.msk.f32.gmra.mrb[8].mxu0 %vm407_vm0, %v288_v3 }
  0x65   : > { %1198 = vmatprep.mubr.msk.f32.mxu0 %vm407_vm0, %v289_v4 }
  0x68   : > { %1199 = vmatmul.mubr.msk.f32.gmra.mrb[10].mxu0 %vm407_vm0, %v290_v5 }
  0x69   : > { %1201 = vmatprep.mubr.msk.f32.mxu0 %vm407_vm0, %v291_v6 }
  0x6c   : > { %1202 = vmatmul.mubr.msk.f32.gmra.mrb[12].mxu0 %vm407_vm0, %v292_v7 }
  0x6d   : > { %1204 = vmatprep.mubr.msk.f32.mxu0 %vm407_vm0, %v293_v8 }
  0x70   : > { %1205 = vmatmul.mubr.msk.f32.gmra.mrb[14].mxu0 %vm407_vm0, %v294_v9 }
  0x87   : > { %v330_v12 = vpop.permute.xlu0 %329 }
  0x88   : > { %v340_v11 = vpop.permute.xlu1 %339 }
  0x8b   : > { %v335_v14 = vpop.permute.xlu0 %334 }
  0x8c   : > { %v345_v13 = vpop.permute.xlu1 %344 }
  0x8f   : > { %v350_v16 = vpop.permute.xlu0 %349 }
  0x90   : > { %v355_v15 = vpop.permute.xlu1 %354 }
  0x93   : > { %v360_v25 = vpop.permute.xlu0 %359 }
  0x94   : > { %v365_v22 = vpop.permute.xlu1 %364 }
  0x97   : > { %v370_v38 = vpop.permute.xlu0 %369 }
  0x98   : > { %v375_v35 = vpop.permute.xlu1 %374 }
  0x9b   : > { %v380_v50 = vpop.permute.xlu0 %379 }
  0x9c   : > { %v385_v47 = vpop.permute.xlu1 %384 }
  0x9f   : > { %v390_v63 = vpop.permute.xlu0 %389 }
  0xa0   : > { %v395_v60 = vpop.permute.xlu1 %394 }
  0xa4   : > { %v405_v8 = vpop.permute.xlu1 %404 }
 0x127   : > { %v1185_v17 = vpop.f32.mrb[0].mxu0 }
 0x128   : > { %v576_v18 = vadd.f32 %v1185_v17, %v335_v14  ;;  %v570_v19 = vpop.f32.mrb[1].mxu0 }
 0x129   : > { %v571_v20 = vadd.f32 %v570_v19, %v330_v12  ;;  %v1321_v19 = vld [vmem:[%s1659_s3 + $0x8] sm:$0xff]  }
 0x12a   : > { %v650_v21 = vmax.f32 %v576_v18, 0.0 }
 0x12b   : > { %v649_v23 = vmax.f32 %v571_v20, 0.0  ;;  %v1188_v24 = vpop.f32.mrb[2].mxu0  ;;  %v1322_v20 = vld [vmem:[%s1659_s3 + $0x10] sm:$0xff]  }
 0x12c   : > { %v586_v26 = vadd.f32 %v1188_v24, %v345_v13  ;;  %v580_v27 = vpop.f32.mrb[3].mxu0  ;;  %v1326_v24 = vld [vmem:[%s1659_s3 + $0x30] sm:$0xff]  }
 0x12d   : > { %v581_v28 = vadd.f32 %v580_v27, %v340_v11  ;;  %v665_v29 = vpack.c.bf16 %v650_v21, %v649_v23  ;;  %v400_v11 = vpop.permute.xlu0 %399  ;;  %v1323_v21 = vld [vmem:[%s1659_s3 + $0x18] sm:$0xff]   ;;  %v1325_v23 = vld [vmem:[%s1659_s3 + $0x28] sm:$0xff]  }
 0x12e   : > { %v652_v30 = vmax.f32 %v586_v26, 0.0  ;;  %v1337_v26 = vmov 0.0  }
 0x12f   : > { %v651_v31 = vmax.f32 %v581_v28, 0.0  ;;  %v1191_v32 = vpop.f32.mrb[4].mxu0  ;;  %1207 = vmatprep.subr.bf16.mxu1 %v665_v29  ;;  %v713_v28 = vpop.permute.xlu1 %712 }
 0x130   : > { %v596_v33 = vadd.f32 %v1191_v32, %v355_v15  ;;  %v590_v34 = vpop.f32.mrb[5].mxu0  ;;  %1208 = vmatpush3.bf16.msra.mxu1 %v665_v29 }
 0x131   : > { %v666_v36 = vpack.c.bf16 %v652_v30, %v651_v31  ;;  %v591_v37 = vadd.f32 %v590_v34, %v350_v16  ;;  %v708_v27 = vpop.permute.xlu0 %707 }
 0x132   : > { %v654_v39 = vmax.f32 %v596_v33, 0.0 }
 0x133   : > { %v653_v40 = vmax.f32 %v591_v37, 0.0  ;;  %v1194_v41 = vpop.f32.mrb[6].mxu0  ;;  %1209 = vmatprep.subr.bf16.mxu1 %v666_v36  ;;  %v723_v30 = vpop.permute.xlu1 %722 }
 0x134   : > { %v606_v42 = vadd.f32 %v1194_v41, %v365_v22  ;;  %v600_v43 = vpop.f32.mrb[7].mxu0  ;;  %1210 = vmatpush3.bf16.msra.mxu1 %v666_v36  ;;  %v1324_v22 = vld [vmem:[%s1659_s3 + $0x20] sm:$0xff]  }
 0x135   : > { %v667_v44 = vpack.c.bf16 %v654_v39, %v653_v40  ;;  %v601_v45 = vadd.f32 %v600_v43, %v360_v25  ;;  %v1327_v25 = vld [vmem:[%s1659_s3 + $0x38] sm:$0xff]   ;;  %v718_v29 = vpop.permute.xlu0 %717 }
 0x136   : > { %v656_v46 = vmax.f32 %v606_v42, 0.0 }
 0x137   : > { %v655_v48 = vmax.f32 %v601_v45, 0.0  ;;  %v1197_v49 = vpop.f32.mrb[8].mxu0  ;;  %1211 = vmatprep.subr.bf16.mxu1 %v667_v44  ;;  %v733_v32 = vpop.permute.xlu1 %732 }
 0x138   : > { %v616_v51 = vadd.f32 %v1197_v49, %v375_v35  ;;  %v610_v52 = vpop.f32.mrb[9].mxu0  ;;  %1212 = vmatpush3.bf16.msra.mxu1 %v667_v44 }
 0x139   : > { %v668_v53 = vpack.c.bf16 %v656_v46, %v655_v48  ;;  %v611_v54 = vadd.f32 %v610_v52, %v370_v38  ;;  %v728_v31 = vpop.permute.xlu0 %727 }
 0x13a   : > { %v658_v55 = vmax.f32 %v616_v51, 0.0 }
 0x13b   : > { %v657_v56 = vmax.f32 %v611_v54, 0.0  ;;  %v1200_v57 = vpop.f32.mrb[10].mxu0  ;;  %1213 = vmatprep.subr.bf16.mxu1 %v668_v53  ;;  %v743_v37 = vpop.permute.xlu1 %742 }
 0x13c   : > { %v626_v58 = vadd.f32 %v1200_v57, %v385_v47  ;;  %v620_v59 = vpop.f32.mrb[11].mxu0  ;;  %1214 = vmatpush3.bf16.msra.mxu1 %v668_v53 }
 0x13d   : > { %v669_v61 = vpack.c.bf16 %v658_v55, %v657_v56  ;;  %v621_v62 = vadd.f32 %v620_v59, %v380_v50  ;;  %v738_v33 = vpop.permute.xlu0 %737 }
 0x13e   : > { %v660_v0 = vmax.f32 %v626_v58, 0.0 }
 0x13f   : > { %v659_v1 = vmax.f32 %v621_v62, 0.0  ;;  %v1203_v2 = vpop.f32.mrb[12].mxu0  ;;  %1215 = vmatprep.subr.bf16.mxu1 %v669_v61  ;;  %v753_v49 = vpop.permute.xlu1 %752 }
 0x140   : > { %v636_v3 = vadd.f32 %v1203_v2, %v395_v60  ;;  %v630_v4 = vpop.f32.mrb[13].mxu0  ;;  %1216 = vmatpush3.bf16.msra.mxu1 %v669_v61 }
 0x141   : > { %v670_v5 = vpack.c.bf16 %v660_v0, %v659_v1  ;;  %v631_v6 = vadd.f32 %v630_v4, %v390_v63  ;;  %v748_v45 = vpop.permute.xlu0 %747 }
 0x142   : > { %v662_v7 = vmax.f32 %v636_v3, 0.0 }
 0x143   : > { %v661_v9 = vmax.f32 %v631_v6, 0.0  ;;  %v1206_v10 = vpop.f32.mrb[14].mxu0  ;;  %1217 = vmatprep.subr.bf16.mxu1 %v670_v5  ;;  %v763_v62 = vpop.permute.xlu1 %762 }
 0x144   : > { %v646_v12 = vadd.f32 %v1206_v10, %v405_v8  ;;  %v640_v13 = vpop.f32.mrb[15].mxu0  ;;  %1218 = vmatpush3.bf16.msra.mxu1 %v670_v5 }
 0x145   : > { %v671_v14 = vpack.c.bf16 %v662_v7, %v661_v9  ;;  %v641_v15 = vadd.f32 %v640_v13, %v400_v11  ;;  %v758_v58 = vpop.permute.xlu0 %757 }
 0x146   : > { %v664_v16 = vmax.f32 %v646_v12, 0.0 }
 0x147   : > { %v663_v17 = vmax.f32 %v641_v15, 0.0  ;;  %1219 = vmatprep.subr.bf16.mxu1 %v671_v14  ;;  %v773_v11 = vpop.permute.xlu1 %772 }
 0x148   : > { %1220 = vmatpush3.bf16.msra.mxu1 %v671_v14 }
 0x149   : > { %v672_v18 = vpack.c.bf16 %v664_v16, %v663_v17  ;;  %v768_v6 = vpop.permute.xlu0 %767 }
 0x14b   : > { %1221 = vmatprep.subr.bf16.mxu1 %v672_v18 }
 0x14c   : > { %1222 = vmatpush3.bf16.msra.mxu1 %v672_v18 }
 0x14d   : > { %1239 = vmatprep.subr.bf16.mxu1 %v1337_v26  ;;  %v778_v18 = vpop.permute.xlu0 %777 }
 0x14f   : > { %1224 = vmatmul.mubr.bf16.vlgmr.msra.gmra.mrb[0].mxu1 %v1321_v19 }
 0x150   : > { %1227 = vmatprep.mubr.bf16.mxu1 %v1322_v20 }
 0x157   : > { %1228 = vmatmul.mubr.bf16.gmra.mrb[4].mxu1 %v1323_v21 }
 0x158   : > { %1231 = vmatprep.mubr.bf16.mxu1 %v1324_v22 }
 0x15f   : > { %1232 = vmatmul.mubr.bf16.gmra.mrb[8].mxu1 %v1325_v23  ;;  %v783_v23 = vpop.permute.xlu1 %782 }
 0x160   : > { %1235 = vmatprep.mubr.bf16.mxu1 %v1326_v24 }
 0x167   : > { %1236 = vmatmul.mubr.bf16.gmra.mrb[12].mxu1 %v1327_v25 }
 0x168   : > { %1255 = vmatprep.mubr.msk.bf16.mxu1 %vm1338_vm2, %v1337_v26 }
 0x222   : > { %v1225_v34 = vpop.f32.mrb[0].mxu1 }
 0x223   : > { %v876_v35 = vadd.f32 %v1225_v34, %v718_v29  ;;  %v867_v36 = vpop.f32.mrb[1].mxu1 }
 0x224   : > { %v868_v38 = vadd.f32 %v867_v36, %v708_v27  ;;  %v1226_v39 = vpop.f32.mrb[2].mxu1  ;;  %v954_v36 = vld [vmem:[%s1661_s5] sm:$0x1] }
 0x225   : > { %v879_v40 = vadd.f32 %v1226_v39, %v723_v30  ;;  %v870_v41 = vpop.f32.mrb[3].mxu1  ;;  %v932_v43 = vmax.f32 %v876_v35, 0.0 }
 0x226   : > { %v871_v42 = vadd.f32 %v870_v41, %v713_v28  ;;  %v930_v46 = vmax.f32 %v868_v38, 0.0 }
 0x227   : > { %v933_v44 = vmax.f32 %v879_v40, 0.0 }
 0x228   : > { %v931_v47 = vmax.f32 %v871_v42, 0.0 }
 0x229   : > { %v947_v48 = vpack.c.bf16 %v933_v44, %v932_v43 }
 0x22a   : > { %v946_v50 = vpack.c.bf16 %v931_v47, %v930_v46  ;;  %v1229_v51 = vpop.f32.mrb[4].mxu1 }
 0x22b   : > { %v892_v52 = vadd.f32 %v1229_v51, %v738_v33  ;;  %v883_v53 = vpop.f32.mrb[5].mxu1 }
 0x22c   : > { %v884_v54 = vadd.f32 %v883_v53, %v728_v31  ;;  %v1230_v55 = vpop.f32.mrb[6].mxu1  ;;  %1240 = vmatpush3.bf16.msra.mxu1 %v946_v50 }
 0x22d   : > { %v895_v56 = vadd.f32 %v1230_v55, %v743_v37  ;;  %v886_v57 = vpop.f32.mrb[7].mxu1  ;;  %1241 = vmatprep.subr.bf16.mxu1 %v1337_v26  ;;  %v936_v60 = vmax.f32 %v892_v52, 0.0  ;;  %v956_v37 = vstv %s955_s15 }
 0x22e   : > { %v887_v59 = vadd.f32 %v886_v57, %v733_v32  ;;  %v934_v63 = vmax.f32 %v884_v54, 0.0 }
 0x22f   : > { %v937_v61 = vmax.f32 %v895_v56, 0.0 }
 0x230   : > { %v935_v0 = vmax.f32 %v887_v59, 0.0  ;;  %1242 = vmatpush3.bf16.msra.mxu1 %v947_v48 }
 0x231   : > { %v949_v1 = vpack.c.bf16 %v937_v61, %v936_v60  ;;  %1243 = vmatprep.subr.bf16.mxu1 %v1337_v26 }
 0x232   : > { %v948_v2 = vpack.c.bf16 %v935_v0, %v934_v63  ;;  %v1233_v3 = vpop.f32.mrb[8].mxu1 }
 0x233   : > { %v908_v4 = vadd.f32 %v1233_v3, %v758_v58  ;;  %v899_v5 = vpop.f32.mrb[9].mxu1 }
 0x234   : > { %v900_v7 = vadd.f32 %v899_v5, %v748_v45  ;;  %v1234_v8 = vpop.f32.mrb[10].mxu1  ;;  %1244 = vmatpush3.bf16.msra.mxu1 %v948_v2 }
 0x235   : > { %v911_v9 = vadd.f32 %v1234_v8, %v763_v62  ;;  %v902_v10 = vpop.f32.mrb[11].mxu1  ;;  %1245 = vmatprep.subr.bf16.mxu1 %v1337_v26  ;;  %v940_v13 = vmax.f32 %v908_v4, 0.0 }
 0x236   : > { %v903_v12 = vadd.f32 %v902_v10, %v753_v49  ;;  %v938_v15 = vmax.f32 %v900_v7, 0.0 }
 0x237   : > { %v941_v14 = vmax.f32 %v911_v9, 0.0 }
 0x238   : > { %v939_v16 = vmax.f32 %v903_v12, 0.0  ;;  %1246 = vmatpush3.bf16.msra.mxu1 %v949_v1 }
 0x239   : > { %v951_v17 = vpack.c.bf16 %v941_v14, %v940_v13  ;;  %1247 = vmatprep.subr.bf16.mxu1 %v1337_v26 }
 0x23a   : > { %v950_v19 = vpack.c.bf16 %v939_v16, %v938_v15  ;;  %v1237_v20 = vpop.f32.mrb[12].mxu1 }
 0x23b   : > { %v924_v21 = vadd.f32 %v1237_v20, %v778_v18  ;;  %v915_v22 = vpop.f32.mrb[13].mxu1 }
 0x23c   : > { %v916_v24 = vadd.f32 %v915_v22, %v768_v6  ;;  %v1238_v25 = vpop.f32.mrb[14].mxu1  ;;  %1248 = vmatpush3.bf16.msra.mxu1 %v950_v19 }
 0x23d   : > { %v927_v27 = vadd.f32 %v1238_v25, %v783_v23  ;;  %v918_v28 = vpop.f32.mrb[15].mxu1  ;;  %1249 = vmatprep.subr.bf16.mxu1 %v1337_v26  ;;  %v944_v30 = vmax.f32 %v924_v21, 0.0 }
 0x23e   : > { %v919_v29 = vadd.f32 %v918_v28, %v773_v11  ;;  %v942_v32 = vmax.f32 %v916_v24, 0.0 }
 0x23f   : > { %v945_v31 = vmax.f32 %v927_v27, 0.0 }
 0x240   : > { %v943_v33 = vmax.f32 %v919_v29, 0.0  ;;  %1250 = vmatpush3.bf16.msra.mxu1 %v951_v17 }
 0x241   : > { %v953_v34 = vpack.c.bf16 %v945_v31, %v944_v30  ;;  %1251 = vmatprep.subr.bf16.mxu1 %v1337_v26 }
 0x242   : > { %v952_v35 = vpack.c.bf16 %v943_v33, %v942_v32 }
 0x244   : > { %1252 = vmatpush3.bf16.msra.mxu1 %v952_v35 }
 0x245   : > { %1253 = vmatprep.subr.bf16.mxu1 %v1337_v26 }
 0x248   : > { %1254 = vmatpush3.bf16.msra.mxu1 %v953_v34 }
 0x24b   : > { %1256 = vmatmul.mubr.bf16.vlgmr.msra.gmra.mrb[16].mxu1 %v954_v36 }
 0x31e   : > { %v991_v38 = vpop.f32.mrb[16].mxu1 }
 0x31f   : > { %v992_v39 = vadd.f32 %v991_v38, %v956_v37  ;;  %v1257_v40 = vpop.f32.mrb[17].mxu1 }
 0x320   : > { %v994_v41 = vpop.f32.mrb[18].mxu1 }
 0x321   : > { %997 = vst [vmem:[%s277_s18] sm:$0x1] %v992_v39  ;;  %v1258_v26 = vpop.f32.mrb[19].mxu1 }
 0x322 PF: > { %s18_s26 = sadd.s32 1, %s1334_s26  }
 0x323   : > { %p15_p5 = scmp.ge.s32.totalorder %s18_s26, 4  }
 0x325   :  { %17 = sbr.rel (!%p15_p5) target bundleno = 2 (0x2), region = 78 }

</bundles_post_ra>
